<compile_context>
chip_gen: v7x
topology: tpu7x:2x2x1
jax: 0.10.0
libtpu: 0.0.40
codegen_flags: <defaults>
</compile_context>

<pallas_src>
import jax
import jax.numpy as jnp
from jax import lax
from jax.experimental import pallas as pl
from jax.experimental.pallas import tpu as pltpu


def _make_rnn_kernel(num_layers: int, seq_len: int, batch: int, hidden: int):
    """Pallas kernel for a `num_layers`-deep tanh-RNN + batched linear head."""

    def kernel(*refs):
        # in_refs : emb (S*B, E), h0 (L, B, H), w_lin (H, C), b_lin (1, C),
        #           then per layer: w_ih (in, H), w_hh (H, H), b (1, H)
        # out_refs: y (L*B, C)
        # scratch : xseq (S*B, H)  -- previous layer's output sequence
        #           xproj (S*B, H) -- current layer's hoisted input projection
        emb_ref, h0_ref, wlin_ref, blin_ref = refs[:4]
        layer_refs = refs[4:4 + 3 * num_layers]
        y_ref = refs[4 + 3 * num_layers]
        xseq, xproj = refs[4 + 3 * num_layers + 1:]

        h_lasts = []
        for l in range(num_layers):
            w_ih = layer_refs[3 * l][...]      # (in_dim, H)
            w_hh = layer_refs[3 * l + 1][...]  # (H, H)
            b = layer_refs[3 * l + 2][...]     # (1, H)  (= b_ih + b_hh)

            # --- hoisted input projection: one (S*B, in) @ (in, H) MXU call per layer.
            # layer 0 reads the embeddings; deeper layers read the previous layer's
            # output sequence (already fully written into xseq).
            x_all = emb_ref[...] if l == 0 else xseq[...]          # (S*B, in_dim)
            xproj[...] = (jnp.dot(x_all, w_ih,
                                  preferred_element_type=jnp.float32) + b)

            last_layer = (l == num_layers - 1)
            h = h0_ref[l]                                          # (B, H)

            # --- fully unrolled recurrence: only h @ W_hh + tanh stays serial.
            for t in range(seq_len):
                xp = xproj[pl.ds(t * batch, batch), :]             # (B, H), static slice
                h = jnp.tanh(xp + jnp.dot(h, w_hh,
                                          preferred_element_type=jnp.float32))
                if not last_layer:
                    xseq[pl.ds(t * batch, batch), :] = h
            h_lasts.append(h)

        # --- batched linear head: one MXU call, one store.
        hcat = jnp.concatenate(h_lasts, axis=0)                    # (L*B, H)
        y_ref[...] = (jnp.dot(hcat, wlin_ref[...],
                              preferred_element_type=jnp.float32)
                      + blin_ref[...])

    return kernel


def text_rnn_forward(x_ids, h0, params):
    """Full TextRNN forward.  x_ids: (B, S) int32 token ids, h0: (L, B, H)."""
    batch, seq = x_ids.shape
    num_layers = len(params["layers"])
    hidden = params["layers"][0]["w_hh_t"].shape[0]
    classes = params["w_lin_t"].shape[1]

    # --- glue: embedding gather + time-major flatten (data-dependent gather stays in XLA)
    emb = jnp.take(params["embedding"], x_ids, axis=0)               # (B, S, E)
    emb = jnp.transpose(emb, (1, 0, 2)).reshape(seq * batch, -1)     # (S*B, E) time-major
    emb = emb.astype(jnp.float32)

    layer_args = []
    for lp in params["layers"]:
        layer_args += [lp["w_ih_t"], lp["w_hh_t"], lp["b"]]          # pre-transposed/summed

    inputs = [emb, h0, params["w_lin_t"], params["b_lin"]] + layer_args

    y_flat = pl.pallas_call(
        _make_rnn_kernel(num_layers, seq, batch, hidden),
        out_shape=jax.ShapeDtypeStruct((num_layers * batch, classes), jnp.float32),
        in_specs=[pl.BlockSpec(memory_space=pltpu.MemorySpace.VMEM)
                  for _ in inputs],
        out_specs=pl.BlockSpec(memory_space=pltpu.MemorySpace.VMEM),
        scratch_shapes=[pltpu.VMEM((seq * batch, hidden), jnp.float32),   # xseq
                        pltpu.VMEM((seq * batch, hidden), jnp.float32)],  # xproj
    )(*inputs)

    y = y_flat.reshape(num_layers, batch, classes)
    # torch: self.linear(hn).squeeze(0) -> no-op squeeze for num_layers > 1
    if y.shape[0] == 1:
        y = jnp.squeeze(y, axis=0)
    return y


def _reference_forward(x_ids, h0, params):
    """Pure-JAX reference implementing the same math (for verification)."""
    emb = jnp.take(params["embedding"], x_ids, axis=0)   # (B, S, E)
    x = emb.astype(jnp.float32)
    hn = []
    for l, lp in enumerate(params["layers"]):
        w_ih_t, w_hh_t, b = lp["w_ih_t"], lp["w_hh_t"], lp["b"][0]

        def step(h, x_t, w_ih_t=w_ih_t, w_hh_t=w_hh_t, b=b):
            h_new = jnp.tanh(x_t @ w_ih_t + h @ w_hh_t + b)
            return h_new, h_new

        h_last, outs = lax.scan(step, h0[l], jnp.transpose(x, (1, 0, 2)))
        x = jnp.transpose(outs, (1, 0, 2))
        hn.append(h_last)
    hn = jnp.stack(hn, axis=0)                           # (L, B, H)
    y = hn @ params["w_lin_t"] + params["b_lin"][0]
    if y.shape[0] == 1:
        y = jnp.squeeze(y, axis=0)
    return y


def init_params(key, vocab_size, embed_size, hidden_size, classes, num_layers):
    # 1 key (embedding) + 4 per layer + 2 (linear head)
    keys = jax.random.split(key, 3 + 4 * num_layers)
    k_it = iter(keys)
    scale = 1.0 / jnp.sqrt(hidden_size)
    params = {
        "embedding": jax.random.normal(next(k_it), (vocab_size, embed_size),
                                       jnp.float32),
        "layers": [],
    }
    for l in range(num_layers):
        in_dim = embed_size if l == 0 else hidden_size
        w_ih = jax.random.uniform(next(k_it), (hidden_size, in_dim),
                                  jnp.float32, -scale, scale)
        w_hh = jax.random.uniform(next(k_it), (hidden_size, hidden_size),
                                  jnp.float32, -scale, scale)
        b_ih = jax.random.uniform(next(k_it), (hidden_size,),
                                  jnp.float32, -scale, scale)
        b_hh = jax.random.uniform(next(k_it), (hidden_size,),
                                  jnp.float32, -scale, scale)
        # store pre-transposed weights / pre-summed bias (no per-call transpose glue)
        params["layers"].append({
            "w_ih_t": jnp.transpose(w_ih),                   # (in_dim, H)
            "w_hh_t": jnp.transpose(w_hh),                   # (H, H)
            "b": (b_ih + b_hh).reshape(1, hidden_size),      # (1, H)
        })
    w_lin = jax.random.uniform(next(k_it), (classes, hidden_size),
                               jnp.float32, -scale, scale)
    b_lin = jax.random.uniform(next(k_it), (classes,),
                               jnp.float32, -scale, scale)
    params["w_lin_t"] = jnp.transpose(w_lin)                 # (H, C)
    params["b_lin"] = b_lin.reshape(1, classes)              # (1, C)
    return params


if __name__ == "__main__":
    vocab_size = 50
    embed_size = 32
    hidden_size = 32
    classes = 4
    num_layers = 3
    batch, seq = 2, 8

    root = jax.random.PRNGKey(0)
    k_params, k_ids, k_h0 = jax.random.split(root, 3)

    params = init_params(k_params, vocab_size, embed_size, hidden_size,
                         classes, num_layers)
    x_ids = jax.random.randint(k_ids, (batch, seq), 0, vocab_size, jnp.int32)
    # forward() draws h0 = torch.randn(num_layers, B, H); drawn deterministically here
    h0 = jax.random.normal(k_h0, (num_layers, batch, hidden_size), jnp.float32)

    y = text_rnn_forward(x_ids, h0, params)
    y = jax.block_until_ready(y)

    y_ref = _reference_forward(x_ids, h0, params)
    assert y.shape == (num_layers, batch, classes), y.shape
    assert jnp.allclose(y, y_ref, atol=1e-4, rtol=1e-4), (
        "mismatch vs reference:\n%s\n%s" % (y, y_ref))

    print("KERNEL_OK")
</pallas_src>

<mosaic_0001>
module attributes {stable_mosaic.version = 11 : i64} {
  func.func @kernel(%arg0: memref<16x32xf32, #tpu.memory_space<vmem>>, %arg1: memref<3x2x32xf32, #tpu.memory_space<vmem>>, %arg2: memref<32x4xf32, #tpu.memory_space<vmem>>, %arg3: memref<1x4xf32, #tpu.memory_space<vmem>>, %arg4: memref<32x32xf32, #tpu.memory_space<vmem>>, %arg5: memref<32x32xf32, #tpu.memory_space<vmem>>, %arg6: memref<1x32xf32, #tpu.memory_space<vmem>>, %arg7: memref<32x32xf32, #tpu.memory_space<vmem>>, %arg8: memref<32x32xf32, #tpu.memory_space<vmem>>, %arg9: memref<1x32xf32, #tpu.memory_space<vmem>>, %arg10: memref<32x32xf32, #tpu.memory_space<vmem>>, %arg11: memref<32x32xf32, #tpu.memory_space<vmem>>, %arg12: memref<1x32xf32, #tpu.memory_space<vmem>>, %arg13: memref<6x4xf32, #tpu.memory_space<vmem>>, %arg14: memref<16x32xf32, #tpu.memory_space<vmem>>, %arg15: memref<16x32xf32, #tpu.memory_space<vmem>>) attributes {dimension_semantics = [], scalar_prefetch = 0 : i64, scratch_operands = 2 : i64, tpu.core_type = #tpu.core_type<tc>} {
    %c0 = arith.constant 0 : index
    %c0_0 = arith.constant 0 : index
    %0 = vector.load %arg4[%c0, %c0_0] : memref<32x32xf32, #tpu.memory_space<vmem>>, vector<32x32xf32>
    %c0_1 = arith.constant 0 : index
    %c0_2 = arith.constant 0 : index
    %1 = vector.load %arg5[%c0_1, %c0_2] : memref<32x32xf32, #tpu.memory_space<vmem>>, vector<32x32xf32>
    %c0_3 = arith.constant 0 : index
    %c0_4 = arith.constant 0 : index
    %2 = vector.load %arg6[%c0_3, %c0_4] : memref<1x32xf32, #tpu.memory_space<vmem>>, vector<1x32xf32>
    %c0_5 = arith.constant 0 : index
    %c0_6 = arith.constant 0 : index
    %3 = vector.load %arg0[%c0_5, %c0_6] : memref<16x32xf32, #tpu.memory_space<vmem>>, vector<16x32xf32>
    %cst = arith.constant dense<0.000000e+00> : vector<16x32xf32>
    %4 = tpu.matmul %3, %0, %cst {dimension_numbers = #tpu.dot_dimension_numbers<[1], [0], [0], [1], [0, 0, 1, 1], [], []>} : vector<16x32xf32>, vector<32x32xf32>, vector<16x32xf32> -> vector<16x32xf32>
    %5 = vector.broadcast %2 : vector<1x32xf32> to vector<16x32xf32>
    %6 = arith.addf %4, %5 : vector<16x32xf32>
    %c0_7 = arith.constant 0 : index
    %c0_8 = arith.constant 0 : index
    %7 = vector.load %arg15[%c0_7, %c0_8] : memref<16x32xf32, #tpu.memory_space<vmem>>, vector<16x32xf32>
    tpu.vector_store %arg15[%c0_7, %c0_8], %6 {strides = array<i32>} : memref<16x32xf32, #tpu.memory_space<vmem>>, vector<16x32xf32>,
    %c0_9 = arith.constant 0 : index
    %c0_10 = arith.constant 0 : index
    %c0_11 = arith.constant 0 : index
    %8 = vector.load %arg1[%c0_9, %c0_10, %c0_11] : memref<3x2x32xf32, #tpu.memory_space<vmem>>, vector<1x2x32xf32>
    %9 = vector.shape_cast %8 : vector<1x2x32xf32> to vector<2x32xf32>
    %c0_12 = arith.constant 0 : index
    %c0_13 = arith.constant 0 : index
    %10 = vector.load %arg15[%c0_12, %c0_13] : memref<16x32xf32, #tpu.memory_space<vmem>>, vector<2x32xf32>
    %cst_14 = arith.constant dense<0.000000e+00> : vector<2x32xf32>
    %11 = tpu.matmul %9, %1, %cst_14 {dimension_numbers = #tpu.dot_dimension_numbers<[1], [0], [0], [1], [0, 0, 1, 1], [], []>} : vector<2x32xf32>, vector<32x32xf32>, vector<2x32xf32> -> vector<2x32xf32>
    %12 = arith.addf %10, %11 : vector<2x32xf32>
    %13 = math.tanh %12 : vector<2x32xf32>
    %c0_15 = arith.constant 0 : index
    %c0_16 = arith.constant 0 : index
    %14 = vector.load %arg14[%c0_15, %c0_16] : memref<16x32xf32, #tpu.memory_space<vmem>>, vector<2x32xf32>
    tpu.vector_store %arg14[%c0_15, %c0_16], %13 {strides = array<i32>} : memref<16x32xf32, #tpu.memory_space<vmem>>, vector<2x32xf32>,
    %c2 = arith.constant 2 : index
    %c0_17 = arith.constant 0 : index
    %15 = vector.load %arg15[%c2, %c0_17] : memref<16x32xf32, #tpu.memory_space<vmem>>, vector<2x32xf32>
    %cst_18 = arith.constant dense<0.000000e+00> : vector<2x32xf32>
    %16 = tpu.matmul %13, %1, %cst_18 {dimension_numbers = #tpu.dot_dimension_numbers<[1], [0], [0], [1], [0, 0, 1, 1], [], []>} : vector<2x32xf32>, vector<32x32xf32>, vector<2x32xf32> -> vector<2x32xf32>
    %17 = arith.addf %15, %16 : vector<2x32xf32>
    %18 = math.tanh %17 : vector<2x32xf32>
    %c2_19 = arith.constant 2 : index
    %c0_20 = arith.constant 0 : index
    %19 = vector.load %arg14[%c2_19, %c0_20] : memref<16x32xf32, #tpu.memory_space<vmem>>, vector<2x32xf32>
    tpu.vector_store %arg14[%c2_19, %c0_20], %18 {strides = array<i32>} : memref<16x32xf32, #tpu.memory_space<vmem>>, vector<2x32xf32>,
    %c4 = arith.constant 4 : index
    %c0_21 = arith.constant 0 : index
    %20 = vector.load %arg15[%c4, %c0_21] : memref<16x32xf32, #tpu.memory_space<vmem>>, vector<2x32xf32>
    %cst_22 = arith.constant dense<0.000000e+00> : vector<2x32xf32>
    %21 = tpu.matmul %18, %1, %cst_22 {dimension_numbers = #tpu.dot_dimension_numbers<[1], [0], [0], [1], [0, 0, 1, 1], [], []>} : vector<2x32xf32>, vector<32x32xf32>, vector<2x32xf32> -> vector<2x32xf32>
    %22 = arith.addf %20, %21 : vector<2x32xf32>
    %23 = math.tanh %22 : vector<2x32xf32>
    %c4_23 = arith.constant 4 : index
    %c0_24 = arith.constant 0 : index
    %24 = vector.load %arg14[%c4_23, %c0_24] : memref<16x32xf32, #tpu.memory_space<vmem>>, vector<2x32xf32>
    tpu.vector_store %arg14[%c4_23, %c0_24], %23 {strides = array<i32>} : memref<16x32xf32, #tpu.memory_space<vmem>>, vector<2x32xf32>,
    %c6 = arith.constant 6 : index
    %c0_25 = arith.constant 0 : index
    %25 = vector.load %arg15[%c6, %c0_25] : memref<16x32xf32, #tpu.memory_space<vmem>>, vector<2x32xf32>
    %cst_26 = arith.constant dense<0.000000e+00> : vector<2x32xf32>
    %26 = tpu.matmul %23, %1, %cst_26 {dimension_numbers = #tpu.dot_dimension_numbers<[1], [0], [0], [1], [0, 0, 1, 1], [], []>} : vector<2x32xf32>, vector<32x32xf32>, vector<2x32xf32> -> vector<2x32xf32>
    %27 = arith.addf %25, %26 : vector<2x32xf32>
    %28 = math.tanh %27 : vector<2x32xf32>
    %c6_27 = arith.constant 6 : index
    %c0_28 = arith.constant 0 : index
    %29 = vector.load %arg14[%c6_27, %c0_28] : memref<16x32xf32, #tpu.memory_space<vmem>>, vector<2x32xf32>
    tpu.vector_store %arg14[%c6_27, %c0_28], %28 {strides = array<i32>} : memref<16x32xf32, #tpu.memory_space<vmem>>, vector<2x32xf32>,
    %c8 = arith.constant 8 : index
    %c0_29 = arith.constant 0 : index
    %30 = vector.load %arg15[%c8, %c0_29] : memref<16x32xf32, #tpu.memory_space<vmem>>, vector<2x32xf32>
    %cst_30 = arith.constant dense<0.000000e+00> : vector<2x32xf32>
    %31 = tpu.matmul %28, %1, %cst_30 {dimension_numbers = #tpu.dot_dimension_numbers<[1], [0], [0], [1], [0, 0, 1, 1], [], []>} : vector<2x32xf32>, vector<32x32xf32>, vector<2x32xf32> -> vector<2x32xf32>
    %32 = arith.addf %30, %31 : vector<2x32xf32>
    %33 = math.tanh %32 : vector<2x32xf32>
    %c8_31 = arith.constant 8 : index
    %c0_32 = arith.constant 0 : index
    %34 = vector.load %arg14[%c8_31, %c0_32] : memref<16x32xf32, #tpu.memory_space<vmem>>, vector<2x32xf32>
    tpu.vector_store %arg14[%c8_31, %c0_32], %33 {strides = array<i32>} : memref<16x32xf32, #tpu.memory_space<vmem>>, vector<2x32xf32>,
    %c10 = arith.constant 10 : index
    %c0_33 = arith.constant 0 : index
    %35 = vector.load %arg15[%c10, %c0_33] : memref<16x32xf32, #tpu.memory_space<vmem>>, vector<2x32xf32>
    %cst_34 = arith.constant dense<0.000000e+00> : vector<2x32xf32>
    %36 = tpu.matmul %33, %1, %cst_34 {dimension_numbers = #tpu.dot_dimension_numbers<[1], [0], [0], [1], [0, 0, 1, 1], [], []>} : vector<2x32xf32>, vector<32x32xf32>, vector<2x32xf32> -> vector<2x32xf32>
    %37 = arith.addf %35, %36 : vector<2x32xf32>
    %38 = math.tanh %37 : vector<2x32xf32>
    %c10_35 = arith.constant 10 : index
    %c0_36 = arith.constant 0 : index
    %39 = vector.load %arg14[%c10_35, %c0_36] : memref<16x32xf32, #tpu.memory_space<vmem>>, vector<2x32xf32>
    tpu.vector_store %arg14[%c10_35, %c0_36], %38 {strides = array<i32>} : memref<16x32xf32, #tpu.memory_space<vmem>>, vector<2x32xf32>,
    %c12 = arith.constant 12 : index
    %c0_37 = arith.constant 0 : index
    %40 = vector.load %arg15[%c12, %c0_37] : memref<16x32xf32, #tpu.memory_space<vmem>>, vector<2x32xf32>
    %cst_38 = arith.constant dense<0.000000e+00> : vector<2x32xf32>
    %41 = tpu.matmul %38, %1, %cst_38 {dimension_numbers = #tpu.dot_dimension_numbers<[1], [0], [0], [1], [0, 0, 1, 1], [], []>} : vector<2x32xf32>, vector<32x32xf32>, vector<2x32xf32> -> vector<2x32xf32>
    %42 = arith.addf %40, %41 : vector<2x32xf32>
    %43 = math.tanh %42 : vector<2x32xf32>
    %c12_39 = arith.constant 12 : index
    %c0_40 = arith.constant 0 : index
    %44 = vector.load %arg14[%c12_39, %c0_40] : memref<16x32xf32, #tpu.memory_space<vmem>>, vector<2x32xf32>
    tpu.vector_store %arg14[%c12_39, %c0_40], %43 {strides = array<i32>} : memref<16x32xf32, #tpu.memory_space<vmem>>, vector<2x32xf32>,
    %c14 = arith.constant 14 : index
    %c0_41 = arith.constant 0 : index
    %45 = vector.load %arg15[%c14, %c0_41] : memref<16x32xf32, #tpu.memory_space<vmem>>, vector<2x32xf32>
    %cst_42 = arith.constant dense<0.000000e+00> : vector<2x32xf32>
    %46 = tpu.matmul %43, %1, %cst_42 {dimension_numbers = #tpu.dot_dimension_numbers<[1], [0], [0], [1], [0, 0, 1, 1], [], []>} : vector<2x32xf32>, vector<32x32xf32>, vector<2x32xf32> -> vector<2x32xf32>
    %47 = arith.addf %45, %46 : vector<2x32xf32>
    %48 = math.tanh %47 : vector<2x32xf32>
    %c14_43 = arith.constant 14 : index
    %c0_44 = arith.constant 0 : index
    %49 = vector.load %arg14[%c14_43, %c0_44] : memref<16x32xf32, #tpu.memory_space<vmem>>, vector<2x32xf32>
    tpu.vector_store %arg14[%c14_43, %c0_44], %48 {strides = array<i32>} : memref<16x32xf32, #tpu.memory_space<vmem>>, vector<2x32xf32>,
    %c0_45 = arith.constant 0 : index
    %c0_46 = arith.constant 0 : index
    %50 = vector.load %arg7[%c0_45, %c0_46] : memref<32x32xf32, #tpu.memory_space<vmem>>, vector<32x32xf32>
    %c0_47 = arith.constant 0 : index
    %c0_48 = arith.constant 0 : index
    %51 = vector.load %arg8[%c0_47, %c0_48] : memref<32x32xf32, #tpu.memory_space<vmem>>, vector<32x32xf32>
    %c0_49 = arith.constant 0 : index
    %c0_50 = arith.constant 0 : index
    %52 = vector.load %arg9[%c0_49, %c0_50] : memref<1x32xf32, #tpu.memory_space<vmem>>, vector<1x32xf32>
    %c0_51 = arith.constant 0 : index
    %c0_52 = arith.constant 0 : index
    %53 = vector.load %arg14[%c0_51, %c0_52] : memref<16x32xf32, #tpu.memory_space<vmem>>, vector<16x32xf32>
    %cst_53 = arith.constant dense<0.000000e+00> : vector<16x32xf32>
    %54 = tpu.matmul %53, %50, %cst_53 {dimension_numbers = #tpu.dot_dimension_numbers<[1], [0], [0], [1], [0, 0, 1, 1], [], []>} : vector<16x32xf32>, vector<32x32xf32>, vector<16x32xf32> -> vector<16x32xf32>
    %55 = vector.broadcast %52 : vector<1x32xf32> to vector<16x32xf32>
    %56 = arith.addf %54, %55 : vector<16x32xf32>
    %c0_54 = arith.constant 0 : index
    %c0_55 = arith.constant 0 : index
    %57 = vector.load %arg15[%c0_54, %c0_55] : memref<16x32xf32, #tpu.memory_space<vmem>>, vector<16x32xf32>
    tpu.vector_store %arg15[%c0_54, %c0_55], %56 {strides = array<i32>} : memref<16x32xf32, #tpu.memory_space<vmem>>, vector<16x32xf32>,
    %c1 = arith.constant 1 : index
    %c0_56 = arith.constant 0 : index
    %c0_57 = arith.constant 0 : index
    %58 = vector.load %arg1[%c1, %c0_56, %c0_57] : memref<3x2x32xf32, #tpu.memory_space<vmem>>, vector<1x2x32xf32>
    %59 = vector.shape_cast %58 : vector<1x2x32xf32> to vector<2x32xf32>
    %c0_58 = arith.constant 0 : index
    %c0_59 = arith.constant 0 : index
    %60 = vector.load %arg15[%c0_58, %c0_59] : memref<16x32xf32, #tpu.memory_space<vmem>>, vector<2x32xf32>
    %cst_60 = arith.constant dense<0.000000e+00> : vector<2x32xf32>
    %61 = tpu.matmul %59, %51, %cst_60 {dimension_numbers = #tpu.dot_dimension_numbers<[1], [0], [0], [1], [0, 0, 1, 1], [], []>} : vector<2x32xf32>, vector<32x32xf32>, vector<2x32xf32> -> vector<2x32xf32>
    %62 = arith.addf %60, %61 : vector<2x32xf32>
    %63 = math.tanh %62 : vector<2x32xf32>
    %c0_61 = arith.constant 0 : index
    %c0_62 = arith.constant 0 : index
    %64 = vector.load %arg14[%c0_61, %c0_62] : memref<16x32xf32, #tpu.memory_space<vmem>>, vector<2x32xf32>
    tpu.vector_store %arg14[%c0_61, %c0_62], %63 {strides = array<i32>} : memref<16x32xf32, #tpu.memory_space<vmem>>, vector<2x32xf32>,
    %c2_63 = arith.constant 2 : index
    %c0_64 = arith.constant 0 : index
    %65 = vector.load %arg15[%c2_63, %c0_64] : memref<16x32xf32, #tpu.memory_space<vmem>>, vector<2x32xf32>
    %cst_65 = arith.constant dense<0.000000e+00> : vector<2x32xf32>
    %66 = tpu.matmul %63, %51, %cst_65 {dimension_numbers = #tpu.dot_dimension_numbers<[1], [0], [0], [1], [0, 0, 1, 1], [], []>} : vector<2x32xf32>, vector<32x32xf32>, vector<2x32xf32> -> vector<2x32xf32>
    %67 = arith.addf %65, %66 : vector<2x32xf32>
    %68 = math.tanh %67 : vector<2x32xf32>
    %c2_66 = arith.constant 2 : index
    %c0_67 = arith.constant 0 : index
    %69 = vector.load %arg14[%c2_66, %c0_67] : memref<16x32xf32, #tpu.memory_space<vmem>>, vector<2x32xf32>
    tpu.vector_store %arg14[%c2_66, %c0_67], %68 {strides = array<i32>} : memref<16x32xf32, #tpu.memory_space<vmem>>, vector<2x32xf32>,
    %c4_68 = arith.constant 4 : index
    %c0_69 = arith.constant 0 : index
    %70 = vector.load %arg15[%c4_68, %c0_69] : memref<16x32xf32, #tpu.memory_space<vmem>>, vector<2x32xf32>
    %cst_70 = arith.constant dense<0.000000e+00> : vector<2x32xf32>
    %71 = tpu.matmul %68, %51, %cst_70 {dimension_numbers = #tpu.dot_dimension_numbers<[1], [0], [0], [1], [0, 0, 1, 1], [], []>} : vector<2x32xf32>, vector<32x32xf32>, vector<2x32xf32> -> vector<2x32xf32>
    %72 = arith.addf %70, %71 : vector<2x32xf32>
    %73 = math.tanh %72 : vector<2x32xf32>
    %c4_71 = arith.constant 4 : index
    %c0_72 = arith.constant 0 : index
    %74 = vector.load %arg14[%c4_71, %c0_72] : memref<16x32xf32, #tpu.memory_space<vmem>>, vector<2x32xf32>
    tpu.vector_store %arg14[%c4_71, %c0_72], %73 {strides = array<i32>} : memref<16x32xf32, #tpu.memory_space<vmem>>, vector<2x32xf32>,
    %c6_73 = arith.constant 6 : index
    %c0_74 = arith.constant 0 : index
    %75 = vector.load %arg15[%c6_73, %c0_74] : memref<16x32xf32, #tpu.memory_space<vmem>>, vector<2x32xf32>
    %cst_75 = arith.constant dense<0.000000e+00> : vector<2x32xf32>
    %76 = tpu.matmul %73, %51, %cst_75 {dimension_numbers = #tpu.dot_dimension_numbers<[1], [0], [0], [1], [0, 0, 1, 1], [], []>} : vector<2x32xf32>, vector<32x32xf32>, vector<2x32xf32> -> vector<2x32xf32>
    %77 = arith.addf %75, %76 : vector<2x32xf32>
    %78 = math.tanh %77 : vector<2x32xf32>
    %c6_76 = arith.constant 6 : index
    %c0_77 = arith.constant 0 : index
    %79 = vector.load %arg14[%c6_76, %c0_77] : memref<16x32xf32, #tpu.memory_space<vmem>>, vector<2x32xf32>
    tpu.vector_store %arg14[%c6_76, %c0_77], %78 {strides = array<i32>} : memref<16x32xf32, #tpu.memory_space<vmem>>, vector<2x32xf32>,
    %c8_78 = arith.constant 8 : index
    %c0_79 = arith.constant 0 : index
    %80 = vector.load %arg15[%c8_78, %c0_79] : memref<16x32xf32, #tpu.memory_space<vmem>>, vector<2x32xf32>
    %cst_80 = arith.constant dense<0.000000e+00> : vector<2x32xf32>
    %81 = tpu.matmul %78, %51, %cst_80 {dimension_numbers = #tpu.dot_dimension_numbers<[1], [0], [0], [1], [0, 0, 1, 1], [], []>} : vector<2x32xf32>, vector<32x32xf32>, vector<2x32xf32> -> vector<2x32xf32>
    %82 = arith.addf %80, %81 : vector<2x32xf32>
    %83 = math.tanh %82 : vector<2x32xf32>
    %c8_81 = arith.constant 8 : index
    %c0_82 = arith.constant 0 : index
    %84 = vector.load %arg14[%c8_81, %c0_82] : memref<16x32xf32, #tpu.memory_space<vmem>>, vector<2x32xf32>
    tpu.vector_store %arg14[%c8_81, %c0_82], %83 {strides = array<i32>} : memref<16x32xf32, #tpu.memory_space<vmem>>, vector<2x32xf32>,
    %c10_83 = arith.constant 10 : index
    %c0_84 = arith.constant 0 : index
    %85 = vector.load %arg15[%c10_83, %c0_84] : memref<16x32xf32, #tpu.memory_space<vmem>>, vector<2x32xf32>
    %cst_85 = arith.constant dense<0.000000e+00> : vector<2x32xf32>
    %86 = tpu.matmul %83, %51, %cst_85 {dimension_numbers = #tpu.dot_dimension_numbers<[1], [0], [0], [1], [0, 0, 1, 1], [], []>} : vector<2x32xf32>, vector<32x32xf32>, vector<2x32xf32> -> vector<2x32xf32>
    %87 = arith.addf %85, %86 : vector<2x32xf32>
    %88 = math.tanh %87 : vector<2x32xf32>
    %c10_86 = arith.constant 10 : index
    %c0_87 = arith.constant 0 : index
    %89 = vector.load %arg14[%c10_86, %c0_87] : memref<16x32xf32, #tpu.memory_space<vmem>>, vector<2x32xf32>
    tpu.vector_store %arg14[%c10_86, %c0_87], %88 {strides = array<i32>} : memref<16x32xf32, #tpu.memory_space<vmem>>, vector<2x32xf32>,
    %c12_88 = arith.constant 12 : index
    %c0_89 = arith.constant 0 : index
    %90 = vector.load %arg15[%c12_88, %c0_89] : memref<16x32xf32, #tpu.memory_space<vmem>>, vector<2x32xf32>
    %cst_90 = arith.constant dense<0.000000e+00> : vector<2x32xf32>
    %91 = tpu.matmul %88, %51, %cst_90 {dimension_numbers = #tpu.dot_dimension_numbers<[1], [0], [0], [1], [0, 0, 1, 1], [], []>} : vector<2x32xf32>, vector<32x32xf32>, vector<2x32xf32> -> vector<2x32xf32>
    %92 = arith.addf %90, %91 : vector<2x32xf32>
    %93 = math.tanh %92 : vector<2x32xf32>
    %c12_91 = arith.constant 12 : index
    %c0_92 = arith.constant 0 : index
    %94 = vector.load %arg14[%c12_91, %c0_92] : memref<16x32xf32, #tpu.memory_space<vmem>>, vector<2x32xf32>
    tpu.vector_store %arg14[%c12_91, %c0_92], %93 {strides = array<i32>} : memref<16x32xf32, #tpu.memory_space<vmem>>, vector<2x32xf32>,
    %c14_93 = arith.constant 14 : index
    %c0_94 = arith.constant 0 : index
    %95 = vector.load %arg15[%c14_93, %c0_94] : memref<16x32xf32, #tpu.memory_space<vmem>>, vector<2x32xf32>
    %cst_95 = arith.constant dense<0.000000e+00> : vector<2x32xf32>
    %96 = tpu.matmul %93, %51, %cst_95 {dimension_numbers = #tpu.dot_dimension_numbers<[1], [0], [0], [1], [0, 0, 1, 1], [], []>} : vector<2x32xf32>, vector<32x32xf32>, vector<2x32xf32> -> vector<2x32xf32>
    %97 = arith.addf %95, %96 : vector<2x32xf32>
    %98 = math.tanh %97 : vector<2x32xf32>
    %c14_96 = arith.constant 14 : index
    %c0_97 = arith.constant 0 : index
    %99 = vector.load %arg14[%c14_96, %c0_97] : memref<16x32xf32, #tpu.memory_space<vmem>>, vector<2x32xf32>
    tpu.vector_store %arg14[%c14_96, %c0_97], %98 {strides = array<i32>} : memref<16x32xf32, #tpu.memory_space<vmem>>, vector<2x32xf32>,
    %c0_98 = arith.constant 0 : index
    %c0_99 = arith.constant 0 : index
    %100 = vector.load %arg10[%c0_98, %c0_99] : memref<32x32xf32, #tpu.memory_space<vmem>>, vector<32x32xf32>
    %c0_100 = arith.constant 0 : index
    %c0_101 = arith.constant 0 : index
    %101 = vector.load %arg11[%c0_100, %c0_101] : memref<32x32xf32, #tpu.memory_space<vmem>>, vector<32x32xf32>
    %c0_102 = arith.constant 0 : index
    %c0_103 = arith.constant 0 : index
    %102 = vector.load %arg12[%c0_102, %c0_103] : memref<1x32xf32, #tpu.memory_space<vmem>>, vector<1x32xf32>
    %c0_104 = arith.constant 0 : index
    %c0_105 = arith.constant 0 : index
    %103 = vector.load %arg14[%c0_104, %c0_105] : memref<16x32xf32, #tpu.memory_space<vmem>>, vector<16x32xf32>
    %cst_106 = arith.constant dense<0.000000e+00> : vector<16x32xf32>
    %104 = tpu.matmul %103, %100, %cst_106 {dimension_numbers = #tpu.dot_dimension_numbers<[1], [0], [0], [1], [0, 0, 1, 1], [], []>} : vector<16x32xf32>, vector<32x32xf32>, vector<16x32xf32> -> vector<16x32xf32>
    %105 = vector.broadcast %102 : vector<1x32xf32> to vector<16x32xf32>
    %106 = arith.addf %104, %105 : vector<16x32xf32>
    %c0_107 = arith.constant 0 : index
    %c0_108 = arith.constant 0 : index
    %107 = vector.load %arg15[%c0_107, %c0_108] : memref<16x32xf32, #tpu.memory_space<vmem>>, vector<16x32xf32>
    tpu.vector_store %arg15[%c0_107, %c0_108], %106 {strides = array<i32>} : memref<16x32xf32, #tpu.memory_space<vmem>>, vector<16x32xf32>,
    %c2_109 = arith.constant 2 : index
    %c0_110 = arith.constant 0 : index
    %c0_111 = arith.constant 0 : index
    %108 = vector.load %arg1[%c2_109, %c0_110, %c0_111] : memref<3x2x32xf32, #tpu.memory_space<vmem>>, vector<1x2x32xf32>
    %109 = vector.shape_cast %108 : vector<1x2x32xf32> to vector<2x32xf32>
    %c0_112 = arith.constant 0 : index
    %c0_113 = arith.constant 0 : index
    %110 = vector.load %arg15[%c0_112, %c0_113] : memref<16x32xf32, #tpu.memory_space<vmem>>, vector<2x32xf32>
    %cst_114 = arith.constant dense<0.000000e+00> : vector<2x32xf32>
    %111 = tpu.matmul %109, %101, %cst_114 {dimension_numbers = #tpu.dot_dimension_numbers<[1], [0], [0], [1], [0, 0, 1, 1], [], []>} : vector<2x32xf32>, vector<32x32xf32>, vector<2x32xf32> -> vector<2x32xf32>
    %112 = arith.addf %110, %111 : vector<2x32xf32>
    %113 = math.tanh %112 : vector<2x32xf32>
    %c2_115 = arith.constant 2 : index
    %c0_116 = arith.constant 0 : index
    %114 = vector.load %arg15[%c2_115, %c0_116] : memref<16x32xf32, #tpu.memory_space<vmem>>, vector<2x32xf32>
    %cst_117 = arith.constant dense<0.000000e+00> : vector<2x32xf32>
    %115 = tpu.matmul %113, %101, %cst_117 {dimension_numbers = #tpu.dot_dimension_numbers<[1], [0], [0], [1], [0, 0, 1, 1], [], []>} : vector<2x32xf32>, vector<32x32xf32>, vector<2x32xf32> -> vector<2x32xf32>
    %116 = arith.addf %114, %115 : vector<2x32xf32>
    %117 = math.tanh %116 : vector<2x32xf32>
    %c4_118 = arith.constant 4 : index
    %c0_119 = arith.constant 0 : index
    %118 = vector.load %arg15[%c4_118, %c0_119] : memref<16x32xf32, #tpu.memory_space<vmem>>, vector<2x32xf32>
    %cst_120 = arith.constant dense<0.000000e+00> : vector<2x32xf32>
    %119 = tpu.matmul %117, %101, %cst_120 {dimension_numbers = #tpu.dot_dimension_numbers<[1], [0], [0], [1], [0, 0, 1, 1], [], []>} : vector<2x32xf32>, vector<32x32xf32>, vector<2x32xf32> -> vector<2x32xf32>
    %120 = arith.addf %118, %119 : vector<2x32xf32>
    %121 = math.tanh %120 : vector<2x32xf32>
    %c6_121 = arith.constant 6 : index
    %c0_122 = arith.constant 0 : index
    %122 = vector.load %arg15[%c6_121, %c0_122] : memref<16x32xf32, #tpu.memory_space<vmem>>, vector<2x32xf32>
    %cst_123 = arith.constant dense<0.000000e+00> : vector<2x32xf32>
    %123 = tpu.matmul %121, %101, %cst_123 {dimension_numbers = #tpu.dot_dimension_numbers<[1], [0], [0], [1], [0, 0, 1, 1], [], []>} : vector<2x32xf32>, vector<32x32xf32>, vector<2x32xf32> -> vector<2x32xf32>
    %124 = arith.addf %122, %123 : vector<2x32xf32>
    %125 = math.tanh %124 : vector<2x32xf32>
    %c8_124 = arith.constant 8 : index
    %c0_125 = arith.constant 0 : index
    %126 = vector.load %arg15[%c8_124, %c0_125] : memref<16x32xf32, #tpu.memory_space<vmem>>, vector<2x32xf32>
    %cst_126 = arith.constant dense<0.000000e+00> : vector<2x32xf32>
    %127 = tpu.matmul %125, %101, %cst_126 {dimension_numbers = #tpu.dot_dimension_numbers<[1], [0], [0], [1], [0, 0, 1, 1], [], []>} : vector<2x32xf32>, vector<32x32xf32>, vector<2x32xf32> -> vector<2x32xf32>
    %128 = arith.addf %126, %127 : vector<2x32xf32>
    %129 = math.tanh %128 : vector<2x32xf32>
    %c10_127 = arith.constant 10 : index
    %c0_128 = arith.constant 0 : index
    %130 = vector.load %arg15[%c10_127, %c0_128] : memref<16x32xf32, #tpu.memory_space<vmem>>, vector<2x32xf32>
    %cst_129 = arith.constant dense<0.000000e+00> : vector<2x32xf32>
    %131 = tpu.matmul %129, %101, %cst_129 {dimension_numbers = #tpu.dot_dimension_numbers<[1], [0], [0], [1], [0, 0, 1, 1], [], []>} : vector<2x32xf32>, vector<32x32xf32>, vector<2x32xf32> -> vector<2x32xf32>
    %132 = arith.addf %130, %131 : vector<2x32xf32>
    %133 = math.tanh %132 : vector<2x32xf32>
    %c12_130 = arith.constant 12 : index
    %c0_131 = arith.constant 0 : index
    %134 = vector.load %arg15[%c12_130, %c0_131] : memref<16x32xf32, #tpu.memory_space<vmem>>, vector<2x32xf32>
    %cst_132 = arith.constant dense<0.000000e+00> : vector<2x32xf32>
    %135 = tpu.matmul %133, %101, %cst_132 {dimension_numbers = #tpu.dot_dimension_numbers<[1], [0], [0], [1], [0, 0, 1, 1], [], []>} : vector<2x32xf32>, vector<32x32xf32>, vector<2x32xf32> -> vector<2x32xf32>
    %136 = arith.addf %134, %135 : vector<2x32xf32>
    %137 = math.tanh %136 : vector<2x32xf32>
    %c14_133 = arith.constant 14 : index
    %c0_134 = arith.constant 0 : index
    %138 = vector.load %arg15[%c14_133, %c0_134] : memref<16x32xf32, #tpu.memory_space<vmem>>, vector<2x32xf32>
    %cst_135 = arith.constant dense<0.000000e+00> : vector<2x32xf32>
    %139 = tpu.matmul %137, %101, %cst_135 {dimension_numbers = #tpu.dot_dimension_numbers<[1], [0], [0], [1], [0, 0, 1, 1], [], []>} : vector<2x32xf32>, vector<32x32xf32>, vector<2x32xf32> -> vector<2x32xf32>
    %140 = arith.addf %138, %139 : vector<2x32xf32>
    %141 = math.tanh %140 : vector<2x32xf32>
    %142 = tpu.concatenate %48, %98, %141 in 0 : vector<2x32xf32>, vector<2x32xf32>, vector<2x32xf32> -> vector<6x32xf32>
    %c0_136 = arith.constant 0 : index
    %c0_137 = arith.constant 0 : index
    %143 = vector.load %arg2[%c0_136, %c0_137] : memref<32x4xf32, #tpu.memory_space<vmem>>, vector<32x4xf32>
    %cst_138 = arith.constant dense<0.000000e+00> : vector<6x4xf32>
    %144 = tpu.matmul %142, %143, %cst_138 {dimension_numbers = #tpu.dot_dimension_numbers<[1], [0], [0], [1], [0, 0, 1, 1], [], []>} : vector<6x32xf32>, vector<32x4xf32>, vector<6x4xf32> -> vector<6x4xf32>
    %c0_139 = arith.constant 0 : index
    %c0_140 = arith.constant 0 : index
    %145 = vector.load %arg3[%c0_139, %c0_140] : memref<1x4xf32, #tpu.memory_space<vmem>>, vector<1x4xf32>
    %146 = vector.broadcast %145 : vector<1x4xf32> to vector<6x4xf32>
    %147 = arith.addf %144, %146 : vector<6x4xf32>
    %c0_141 = arith.constant 0 : index
    %c0_142 = arith.constant 0 : index
    %148 = vector.load %arg13[%c0_141, %c0_142] : memref<6x4xf32, #tpu.memory_space<vmem>>, vector<6x4xf32>
    tpu.vector_store %arg13[%c0_141, %c0_142], %147 {strides = array<i32>} : memref<6x4xf32, #tpu.memory_space<vmem>>, vector<6x4xf32>,
    return
  }
}

</mosaic_0001>

<bundles_post_ra>
// kernel: tpu_custom_call.1
= control target key start
LH: loop header
LB: loop body
LE: loop exit
PB: predicated region body
PF: predicated region fallthrough
CT: control target
= control target key end

     0   :  { %18 = vsyncpa [#allocation5], 0  ;;  %s3680_s0 = inlined_call_operand.hbm [shape: f32[16,32], index: 0, kind: input, shape index: {}]   ;;  %s3681_s1 = inlined_call_operand.hbm [shape: f32[3,2,32], index: 1, kind: input, shape index: {}]   ;;  %s3682_s2 = inlined_call_operand.vmem [shape: f32[32,4], index: 2, kind: input, shape index: {}]   ;;  %s3683_s3 = inlined_call_operand.vmem [shape: f32[1,4], index: 3, kind: input, shape index: {}]   ;;  %s3684_s4 = inlined_call_operand.vmem [shape: f32[32,32], index: 4, kind: input, shape index: {}]   ;;  %s3685_s5 = inlined_call_operand.hbm [shape: f32[32,32], index: 5, kind: input, shape index: {}]   ;;  %s3686_s6 = inlined_call_operand.vmem [shape: f32[1,32], index: 6, kind: input, shape index: {}]   ;;  %s3687_s7 = inlined_call_operand.hbm [shape: f32[32,32], index: 7, kind: input, shape index: {}]   ;;  %s3688_s8 = inlined_call_operand.vmem [shape: f32[32,32], index: 8, kind: input, shape index: {}]   ;;  %s3689_s9 = inlined_call_operand.vmem [shape: f32[1,32], index: 9, kind: input, shape index: {}]   ;;  %s3690_s10 = inlined_call_operand.hbm [shape: f32[32,32], index: 10, kind: input, shape index: {}]   ;;  %s3691_s11 = inlined_call_operand.hbm [shape: f32[32,32], index: 11, kind: input, shape index: {}]   ;;  %s3692_s12 = inlined_call_operand.vmem [shape: f32[1,32], index: 12, kind: input, shape index: {}]   ;;  %s3693_s13 = inlined_call_operand.vmem [shape: f32[6,4], index: 13, kind: output, shape index: {}]  }
   0x1   :  { %19 = vsyncpa [#allocation7], 0 }
   0x2   :  { %20 = vsyncpa [#allocation10], 0 }
   0x3   :  { %21 = vsyncpa [#allocation13], 0  ;;  %s3238_s25 = smov [#allocation6]   ;;  %s3098_s29 = scalar_lea.hbm %s3681_s1, 96 }
   0x4   :  { %s39_s26 = sshll.u32 %s3238_s25, 4  ;;  %p3099_p0 = scmp.ne.s32.totalorder %s3681_s1, %s3098_s29  ;;  %s40_s26 = int_to_ptr.vmem [resolvable:$true] %s39_s26 }
   0x5   :  { %p3102_p1 = scmp.lt.u32.totalorder %s3098_s29, %s3681_s1 }
   0x7   :  { %p3104_p2 = pnand %p3102_p1, %p3099_p0 }
   0x9   :  { %3107 = shalt.err (!%p3104_p2)
}
   0xa   :  { %s3108_s17 = scalar_lea.vmem %s40_s26, 96  ;;  %p3113_p4 = scmp.lt.s32.totalorder %s40_s26, %s40_s26 }
   0xb   :  { %p3109_p3 = scmp.ne.s32.totalorder %s40_s26, %s3108_s17  ;;  %p3114_p5 = scmp.lt.s32.totalorder %s3108_s17, %s3108_s17 }
   0xd   :  { %p3115_p6 = por %p3114_p5, %p3113_p4 }
   0xf   :  { %p3116_p7 = pnand %p3115_p6, %p3109_p3 }
  0x11   :  { %3119 = shalt.err (!%p3116_p7)
}
  0x12   :  { %s3239_s18 = smov 32   ;;  %s3240_s19 = smov 2  }
  0x13   :  { %45 = dma.hbm_to_vmem [thread:$0]  %s3681_s1, 96, %s40_s26, [#allocation7], %s3239_s18, %s3239_s18, %s3240_s19  }
  0x14   :  { %s3241_s22 = smov [#allocation9]   ;;  %s3242_s24 = smov [#allocation4]  }
  0x15   :  { %s71_s23 = sshll.u32 %s3241_s22, 4  ;;  %s27_s25 = sshll.u32 %s3242_s24, 4  ;;  %s72_s23 = int_to_ptr.vmem [resolvable:$true] %s71_s23  ;;  %s28_s25 = int_to_ptr.vmem [resolvable:$true] %s27_s25 }
  0x16   :  { %s3120_s29 = scalar_lea.hbm %s3687_s7, 512 }
  0x17   :  { %p3121_p8 = scmp.ne.s32.totalorder %s3687_s7, %s3120_s29  ;;  %p3124_p9 = scmp.lt.u32.totalorder %s3120_s29, %s3687_s7 }
  0x19   :  { %p3126_p10 = pnand %p3124_p9, %p3121_p8 }
  0x1b   :  { %3129 = shalt.err (!%p3126_p10)
}
  0x1c   :  { %s3130_s1 = scalar_lea.vmem %s72_s23, 512  ;;  %p3135_p12 = scmp.lt.s32.totalorder %s72_s23, %s72_s23 }
  0x1d   :  { %p3131_p11 = scmp.ne.s32.totalorder %s72_s23, %s3130_s1  ;;  %p3136_p13 = scmp.lt.s32.totalorder %s3130_s1, %s3130_s1 }
  0x1f   :  { %p3137_p0 = por %p3136_p13, %p3135_p12 }
  0x21   :  { %p3138_p1 = pnand %p3137_p0, %p3131_p11 }
  0x23   :  { %3141 = shalt.err (!%p3138_p1)
}
  0x24   :  { %s3243_s26 = smov 128   ;;  %s3244_s17 = smov 8  }
  0x25   :  { %77 = dma.hbm_to_vmem [thread:$0]  %s3687_s7, 512, %s72_s23, [#allocation10], %s3243_s26, %s3243_s26, %s3244_s17  }
  0x26   :  { %s3142_s22 = scalar_lea.hbm %s3680_s0, 256 }
  0x27   :  { %p3143_p2 = scmp.ne.s32.totalorder %s3680_s0, %s3142_s22  ;;  %p3146_p3 = scmp.lt.u32.totalorder %s3142_s22, %s3680_s0 }
  0x29   :  { %p3148_p4 = pnand %p3146_p3, %p3143_p2 }
  0x2b   :  { %3151 = shalt.err (!%p3148_p4)
}
  0x2c   :  { %s3152_s30 = scalar_lea.vmem %s28_s25, 256  ;;  %p3157_p6 = scmp.lt.s32.totalorder %s28_s25, %s28_s25 }
  0x2d   :  { %p3153_p5 = scmp.ne.s32.totalorder %s28_s25, %s3152_s30  ;;  %p3158_p7 = scmp.lt.s32.totalorder %s3152_s30, %s3152_s30 }
  0x2f   :  { %p3159_p8 = por %p3158_p7, %p3157_p6 }
  0x31   :  { %p3160_p9 = pnand %p3159_p8, %p3153_p5 }
  0x33   :  { %3163 = shalt.err (!%p3160_p9)
}
  0x34   :  { %33 = dma.hbm_to_vmem [thread:$0]  %s3680_s0, 256, %s28_s25, [#allocation5], %s3243_s26, %s3243_s26, %s3244_s17  }
  0x35   :  { %s3245_s14 = smov [#allocation8]   ;;  %s3246_s16 = smov [#allocation11]  }
  0x36   :  { %s57_s15 = sshll.u32 %s3245_s14, 4  ;;  %s87_s1 = sshll.u32 %s3246_s16, 4  ;;  %s58_s15 = int_to_ptr.vmem [resolvable:$true] %s57_s15  ;;  %s88_s1 = int_to_ptr.vmem [resolvable:$true] %s87_s1 }
  0x37   :  { %s3164_s20 = scalar_lea.hbm %s3685_s5, 512 }
  0x38   :  { %p3165_p10 = scmp.ne.s32.totalorder %s3685_s5, %s3164_s20  ;;  %p3168_p11 = scmp.lt.u32.totalorder %s3164_s20, %s3685_s5 }
  0x3a   :  { %p3170_p12 = pnand %p3168_p11, %p3165_p10 }
  0x3c   :  { %3173 = shalt.err (!%p3170_p12)
}
  0x3d   :  { %s3174_s0 = scalar_lea.vmem %s58_s15, 512  ;;  %p3179_p0 = scmp.lt.s32.totalorder %s58_s15, %s58_s15 }
  0x3e   :  { %p3175_p13 = scmp.ne.s32.totalorder %s58_s15, %s3174_s0  ;;  %p3180_p1 = scmp.lt.s32.totalorder %s3174_s0, %s3174_s0 }
  0x40   :  { %p3181_p2 = por %p3180_p1, %p3179_p0 }
  0x42   :  { %p3182_p3 = pnand %p3181_p2, %p3175_p13 }
  0x44   :  { %3185 = shalt.err (!%p3182_p3)
}
  0x45   :  { %63 = dma.hbm_to_vmem [thread:$0]  %s3685_s5, 512, %s58_s15, [#allocation7], %s3243_s26, %s3243_s26, %s3244_s17  }
  0x46   :  { %s3186_s7 = scalar_lea.hbm %s3690_s10, 512 }
  0x47   :  { %p3187_p4 = scmp.ne.s32.totalorder %s3690_s10, %s3186_s7  ;;  %p3190_p5 = scmp.lt.u32.totalorder %s3186_s7, %s3690_s10 }
  0x49   :  { %p3192_p6 = pnand %p3190_p5, %p3187_p4 }
  0x4b   :  { %3195 = shalt.err (!%p3192_p6)
}
  0x4c   :  { %s3196_s19 = scalar_lea.vmem %s88_s1, 512  ;;  %p3201_p8 = scmp.lt.s32.totalorder %s88_s1, %s88_s1 }
  0x4d   :  { %p3197_p7 = scmp.ne.s32.totalorder %s88_s1, %s3196_s19  ;;  %p3202_p9 = scmp.lt.s32.totalorder %s3196_s19, %s3196_s19 }
  0x4f   :  { %p3203_p10 = por %p3202_p9, %p3201_p8 }
  0x51   :  { %p3204_p11 = pnand %p3203_p10, %p3197_p7 }
  0x53   :  { %3207 = shalt.err (!%p3204_p11)
}
  0x54   :  { %93 = dma.hbm_to_vmem [thread:$0]  %s3690_s10, 512, %s88_s1, [#allocation10], %s3243_s26, %s3243_s26, %s3244_s17  }
  0x55   :  { %s3247_s20 = smov [#allocation12]   ;;  %s3208_s27 = scalar_lea.hbm %s3691_s11, 512 }
  0x56   :  { %s99_s21 = sshll.u32 %s3247_s20, 4  ;;  %p3209_p12 = scmp.ne.s32.totalorder %s3691_s11, %s3208_s27  ;;  %s100_s21 = int_to_ptr.vmem [resolvable:$true] %s99_s21 }
  0x57   :  { %p3212_p13 = scmp.lt.u32.totalorder %s3208_s27, %s3691_s11 }
  0x59   :  { %p3214_p0 = pnand %p3212_p13, %p3209_p12 }
  0x5b   :  { %3217 = shalt.err (!%p3214_p0)
}
  0x5c   :  { %s3218_s30 = scalar_lea.vmem %s100_s21, 512  ;;  %p3223_p2 = scmp.lt.s32.totalorder %s100_s21, %s100_s21 }
  0x5d   :  { %p3219_p1 = scmp.ne.s32.totalorder %s100_s21, %s3218_s30  ;;  %p3224_p3 = scmp.lt.s32.totalorder %s3218_s30, %s3218_s30 }
  0x5f   :  { %p3225_p4 = por %p3224_p3, %p3223_p2 }
  0x61   :  { %p3226_p5 = pnand %p3225_p4, %p3219_p1 }
  0x63   :  { %3229 = shalt.err (!%p3226_p5)
}
  0x64   :  { %105 = dma.hbm_to_vmem [thread:$0]  %s3691_s11, 512, %s100_s21, [#allocation13], %s3243_s26, %s3243_s26, %s3244_s17  }
  0x65   :  { %3230 = dma.done.wait [#allocation5], 256  }
  0x66   :  { %3231 = vsyncadd [#allocation5], 4294967040 }
  0x67   :  { %3232 = dma.done.wait [#allocation7], 608  }
  0x68   :  { %3233 = vsyncadd [#allocation7], 4294966688 }
  0x69   :  { %3234 = dma.done.wait [#allocation10], 1024  }
  0x6a   :  { %3235 = vsyncadd [#allocation10], 4294966272 }
  0x6b   :  { %3236 = dma.done.wait [#allocation13], 512  }
  0x6c   :  { %3237 = vsyncadd [#allocation13], 4294966784  ;;  %v3248_v0 = vmov 0.0|0.0   ;;  %vm3249_vm0 = vmmov 0   ;;  %v3250_v1 = vmov 0.0   ;;  %vm143_vm1 = vcmask 261120  }
  0x6d   :  { %2871 = vmatprep.subr.bf16.mxu1 %v3248_v0  ;;  %2574 = vmatprep.mubr.msk.f32.mxu1 %vm3249_vm0, %v3250_v1  ;;  %v126_v2 = vld [vmem:[%s3684_s4] sm:$0xff]  ;;  %v127_v3 = vld [vmem:[%s3684_s4 + $0x8] sm:$0xff]  ;;  %v128_v4 = vld [vmem:[%s3684_s4 + $0x10] sm:$0xff]  ;;  %vm304_vm2 = vcmask 254976   ;;  %vm2279_vm3 = vcmask 1041408   ;;  %vm2281_vm4 = vcmask 1043456  }
  0x6e   :  { %v2863_v5 = vpack.c.bf16 %v127_v3, %v126_v2  ;;  %v129_v6 = vld [vmem:[%s3684_s4 + $0x18] sm:$0xff]  ;;  %v135_v7 = vld [vmem:[#allocation4] sm:$0xff]  ;;  %v133_v13 = vld [vmem:[#allocation8 + $0x18] sm:$0xff]  ;;  %vm2367_vm5 = vcmask 29696  }
  0x6f   :  { %v2867_v8 = vpack.c.bf16 %v129_v6, %v128_v4  ;;  %2563 = vmatprep.mubr.msk.f32.mxu0 %vm143_vm1, %v135_v7  ;;  %v130_v9 = vld [vmem:[#allocation8] sm:$0xff]  ;;  %v131_v10 = vld [vmem:[#allocation8 + $0x8] sm:$0xff]  ;;  %v132_v11 = vld [vmem:[#allocation8 + $0x10] sm:$0xff] }
  0x70   :  { %2864 = vmatprep.subr.bf16.mxu0 %v2863_v5  ;;  %v3424_v12 = vpack.c.bf16 %v131_v10, %v130_v9  ;;  %v3427_v14 = vpack.c.bf16 %v133_v13, %v132_v11  ;;  %v136_v15 = vld [vmem:[#allocation4 + $0x8] sm:$0xff]  ;;  %v227_v16 = vld [vmem:[#allocation6] sm:$0x3]  ;;  %v2377_v17 = vld [vmem:[%s3686_s6] ss:$0 sm:$0xff] }
  0x71   :  { %2866 = vmatpush3.bf16.msra.mxu0 %v2863_v5  ;;  %v845_v58 = vld [vmem:[#allocation9] sm:$0xff]  ;;  %v846_v59 = vld [vmem:[#allocation9 + $0x8] sm:$0xff]  ;;  %v847_v61 = vld [vmem:[#allocation9 + $0x10] sm:$0xff] }
  0x72   :  { %2868 = vmatprep.subr.bf16.mxu0 %v2867_v8  ;;  %2873 = vmatpush3.bf16.msra.mxu1 %v3424_v12  ;;  %v2919_v60 = vpack.c.bf16 %v846_v59, %v845_v58  ;;  %v848_v62 = vld [vmem:[#allocation9 + $0x18] sm:$0xff]  ;;  %v849_v2 = vld [vmem:[%s3688_s8] sm:$0xff]  ;;  %v852_v6 = vld [vmem:[%s3688_s8 + $0x18] sm:$0xff] }
  0x73   :  { %2874 = vmatprep.subr.bf16.mxu1 %v3248_v0  ;;  %v2923_v63 = vpack.c.bf16 %v848_v62, %v847_v61  ;;  %v850_v3 = vld [vmem:[%s3688_s8 + $0x8] sm:$0xff]  ;;  %v851_v4 = vld [vmem:[%s3688_s8 + $0x10] sm:$0xff] }
  0x74   :  { %v3508_v5 = vpack.c.bf16 %v850_v3, %v849_v2  ;;  %v3514_v7 = vpack.c.bf16 %v852_v6, %v851_v4  ;;  %v1565_v59 = vld [vmem:[#allocation11 + $0x10] sm:$0xff]  ;;  %v1567_v62 = vld [vmem:[#allocation12] sm:$0xff]  ;;  %v1570_v4 = vld [vmem:[#allocation12 + $0x18] sm:$0xff] }
  0x75   :  { %2870 = vmatpush3.bf16.msra.mxu0 %v2867_v8  ;;  %v946_v8 = vld [vmem:[#allocation6 + $0x2] sm:$0x3]  ;;  %v1569_v2 = vld [vmem:[#allocation12 + $0x10] sm:$0xff]  ;;  %v1664_v6 = vld [vmem:[#allocation6 + $0x4] sm:$0x3] }
  0x76   :  { %2876 = vmatpush3.bf16.msra.mxu1 %v3427_v14  ;;  %2877 = vmatprep.subr.bf16.mxu0 %v3248_v0 }
  0x77   :  { %2883 = vmatprep.subr.bf16.mxu1 %v3248_v0 }
  0x78   :  { %2564 = vmatmul.mubr.msk.f32.vlgmr.msra.gmra.mrb[0].mxu0 %vm143_vm1, %v136_v15 }
  0x79   :  { %2575 = vmatmul.mubr.msk.f32.vlgmr.msra.gmra.mrb[0].mxu1 %vm143_vm1, %v227_v16  ;;  %2879 = vmatpush3.bf16.msra.mxu0 %v3424_v12 }
  0x7a   :  { %2880 = vmatprep.subr.bf16.mxu0 %v3248_v0  ;;  %2585 = vmatprep.mubr.msk.f32.mxu0 %vm3249_vm0, %v3250_v1 }
  0x7b   :  { %2885 = vmatpush3.bf16.msra.mxu1 %v3424_v12  ;;  %2596 = vmatprep.mubr.msk.f32.mxu1 %vm3249_vm0, %v3250_v1 }
  0x7c   :  { %2886 = vmatprep.subr.bf16.mxu1 %v3248_v0 }
  0x7d   :  { %2882 = vmatpush3.bf16.msra.mxu0 %v3427_v14 }
  0x7e   :  { %2889 = vmatprep.subr.bf16.mxu0 %v3248_v0 }
  0x7f   :  { %2888 = vmatpush3.bf16.msra.mxu1 %v3427_v14 }
  0x80   :  { %2895 = vmatprep.subr.bf16.mxu1 %v3248_v0 }
 0x14b   :  { %v2565_v18 = vpop.f32.mrb[0].mxu0 }
 0x14c   :  { %v222_v19 = vadd.f32 %v2565_v18, %v2377_v17  ;;  %v216_v20 = vpop.f32.mrb[1].mxu0  ;;  %v298_v21 = vpop.f32.mrb[0].mxu1 }
 0x14d   :  { %v217_v22 = vadd.f32 %v2377_v17, %v216_v20  ;;  %v2576_v23 = vpop.f32.mrb[1].mxu1  ;;  %v2388_v17 = vld [vmem:[%s3689_s9] ss:$0 sm:$0xff] }
 0x14e   :  { %226 = vst.msk [vmem:[#allocation3 + $0x8] sm:$0xff] %vm143_vm1, %v222_v19 }
 0x14f   :  { %225 = vst.msk [vmem:[#allocation3] sm:$0xff] %vm143_vm1, %v217_v22 }
 0x155   :  { %v537_v42 = vld [vmem:[#allocation3 + $0x8] sm:$0x3]  ;;  %v614_v47 = vld [vmem:[#allocation3 + $0xa] sm:$0x3]  ;;  %v691_v53 = vld [vmem:[#allocation3 + $0xc] sm:$0x3] }
 0x156   :  { %v228_v24 = vld [vmem:[#allocation3] sm:$0x3]  ;;  %v306_v27 = vld [vmem:[#allocation3 + $0x2] sm:$0x3]  ;;  %v383_v32 = vld [vmem:[#allocation3 + $0x4] sm:$0x3] }
 0x157   :  { %v302_v25 = vadd.f32 %v298_v21, %v228_v24  ;;  %v460_v37 = vld [vmem:[#allocation3 + $0x6] sm:$0x3]  ;;  %v768_v9 = vld [vmem:[#allocation3 + $0xe] sm:$0x3] }
 0x159   :  { %3050 = vtanh.f32 %v302_v25 }
 0x163   :  { %v3051_v26 = vpop.eup %3050 }
 0x164   :  { %305 = vst.msk [vmem:[#allocation2] sm:$0x3] %vm304_vm2, %v3051_v26  ;;  %2586 = vmatmul.mubr.msk.f32.vlgmr.msra.gmra.mrb[2].mxu0 %vm143_vm1, %v3051_v26 }
 0x165   :  { %2891 = vmatpush3.bf16.msra.mxu0 %v3424_v12  ;;  %2607 = vmatprep.mubr.msk.f32.mxu0 %vm3249_vm0, %v3250_v1 }
 0x166   :  { %2892 = vmatprep.subr.bf16.mxu0 %v3248_v0 }
 0x169   :  { %2894 = vmatpush3.bf16.msra.mxu0 %v3427_v14 }
 0x16a   :  { %2901 = vmatprep.subr.bf16.mxu0 %v3248_v0 }
 0x237   :  { %v376_v28 = vpop.f32.mrb[2].mxu0 }
 0x238   :  { %v380_v29 = vadd.f32 %v376_v28, %v306_v27  ;;  %v2587_v30 = vpop.f32.mrb[3].mxu0 }
 0x23a   :  { %3052 = vtanh.f32 %v380_v29 }
 0x244   :  { %v3053_v31 = vpop.eup %3052 }
 0x245   :  { %382 = vst.msk [vmem:[#allocation2 + $0x2] sm:$0x3] %vm304_vm2, %v3053_v31  ;;  %2597 = vmatmul.mubr.msk.f32.vlgmr.msra.gmra.mrb[2].mxu1 %vm143_vm1, %v3053_v31 }
 0x246   :  { %2897 = vmatpush3.bf16.msra.mxu1 %v3424_v12  ;;  %2618 = vmatprep.mubr.msk.f32.mxu1 %vm3249_vm0, %v3250_v1 }
 0x247   :  { %2898 = vmatprep.subr.bf16.mxu1 %v3248_v0 }
 0x24a   :  { %2900 = vmatpush3.bf16.msra.mxu1 %v3427_v14 }
 0x24b   :  { %2907 = vmatprep.subr.bf16.mxu1 %v3248_v0 }
 0x318   :  { %v453_v33 = vpop.f32.mrb[2].mxu1 }
 0x319   :  { %v457_v34 = vadd.f32 %v453_v33, %v383_v32  ;;  %v2598_v35 = vpop.f32.mrb[3].mxu1 }
 0x31b   :  { %3054 = vtanh.f32 %v457_v34 }
 0x325   :  { %v3055_v36 = vpop.eup %3054 }
 0x326   :  { %459 = vst.msk [vmem:[#allocation2 + $0x4] sm:$0x3] %vm304_vm2, %v3055_v36  ;;  %2608 = vmatmul.mubr.msk.f32.vlgmr.msra.gmra.mrb[4].mxu0 %vm143_vm1, %v3055_v36 }
 0x327   :  { %2903 = vmatpush3.bf16.msra.mxu0 %v3424_v12  ;;  %2629 = vmatprep.mubr.msk.f32.mxu0 %vm3249_vm0, %v3250_v1 }
 0x328   :  { %2904 = vmatprep.subr.bf16.mxu0 %v3248_v0 }
 0x32b   :  { %2906 = vmatpush3.bf16.msra.mxu0 %v3427_v14 }
 0x32c   :  { %2913 = vmatprep.subr.bf16.mxu0 %v3248_v0 }
 0x3f9   :  { %v530_v38 = vpop.f32.mrb[4].mxu0 }
 0x3fa   :  { %v534_v39 = vadd.f32 %v530_v38, %v460_v37  ;;  %v2609_v40 = vpop.f32.mrb[5].mxu0 }
 0x3fc   :  { %3056 = vtanh.f32 %v534_v39 }
 0x406   :  { %v3057_v41 = vpop.eup %3056 }
 0x407   :  { %536 = vst.msk [vmem:[#allocation2 + $0x6] sm:$0x3] %vm304_vm2, %v3057_v41  ;;  %2619 = vmatmul.mubr.msk.f32.vlgmr.msra.gmra.mrb[4].mxu1 %vm143_vm1, %v3057_v41 }
 0x408   :  { %2909 = vmatpush3.bf16.msra.mxu1 %v3424_v12  ;;  %2640 = vmatprep.mubr.msk.f32.mxu1 %vm3249_vm0, %v3250_v1 }
 0x409   :  { %2910 = vmatprep.subr.bf16.mxu1 %v3248_v0 }
 0x40c   :  { %2912 = vmatpush3.bf16.msra.mxu1 %v3427_v14 }
 0x40d   :  { %2920 = vmatprep.subr.bf16.mxu1 %v2919_v60 }
 0x40e   :  { %v854_v52 = vld [vmem:[#allocation2] sm:$0xff] }
 0x4da   :  { %v607_v43 = vpop.f32.mrb[4].mxu1 }
 0x4db   :  { %v611_v44 = vadd.f32 %v607_v43, %v537_v42  ;;  %v2620_v45 = vpop.f32.mrb[5].mxu1 }
 0x4dd   :  { %3058 = vtanh.f32 %v611_v44 }
 0x4e7   :  { %v3059_v46 = vpop.eup %3058 }
 0x4e8   :  { %613 = vst.msk [vmem:[#allocation2 + $0x8] sm:$0x3] %vm304_vm2, %v3059_v46  ;;  %2630 = vmatmul.mubr.msk.f32.vlgmr.msra.gmra.mrb[6].mxu0 %vm143_vm1, %v3059_v46 }
 0x4e9   :  { %2915 = vmatpush3.bf16.msra.mxu0 %v3424_v12  ;;  %2651 = vmatprep.mubr.msk.f32.mxu0 %vm3249_vm0, %v3250_v1 }
 0x4ea   :  { %2916 = vmatprep.subr.bf16.mxu0 %v3248_v0 }
 0x4ed   :  { %2918 = vmatpush3.bf16.msra.mxu0 %v3427_v14 }
 0x4ee   :  { %2927 = vmatprep.subr.bf16.mxu0 %v3248_v0 }
 0x5bb   :  { %v684_v48 = vpop.f32.mrb[6].mxu0 }
 0x5bc   :  { %v688_v49 = vadd.f32 %v684_v48, %v614_v47  ;;  %v2631_v50 = vpop.f32.mrb[7].mxu0 }
 0x5be   :  { %3060 = vtanh.f32 %v688_v49 }
 0x5c8   :  { %v3061_v51 = vpop.eup %3060 }
 0x5c9   :  { %690 = vst.msk [vmem:[#allocation2 + $0xa] sm:$0x3] %vm304_vm2, %v3061_v51  ;;  %2641 = vmatmul.mubr.msk.f32.vlgmr.msra.gmra.mrb[6].mxu1 %vm143_vm1, %v3061_v51 }
 0x5ca   :  { %2662 = vmatprep.mubr.msk.f32.mxu1 %vm143_vm1, %v854_v52  ;;  %2922 = vmatpush3.bf16.msra.mxu1 %v2919_v60  ;;  %v1566_v60 = vld [vmem:[#allocation11 + $0x18] sm:$0xff] }
 0x5cb   :  { %2924 = vmatprep.subr.bf16.mxu1 %v2923_v63  ;;  %v2979_v61 = vpack.c.bf16 %v1566_v60, %v1565_v59 }
 0x5ce   :  { %2926 = vmatpush3.bf16.msra.mxu1 %v2923_v63  ;;  %v1568_v63 = vld [vmem:[#allocation12 + $0x8] sm:$0xff] }
 0x5cf   :  { %2933 = vmatprep.subr.bf16.mxu1 %v3248_v0  ;;  %v3589_v3 = vpack.c.bf16 %v1568_v63, %v1567_v62 }
 0x69c   :  { %v761_v54 = vpop.f32.mrb[6].mxu1 }
 0x69d   :  { %v765_v55 = vadd.f32 %v761_v54, %v691_v53  ;;  %v2642_v56 = vpop.f32.mrb[7].mxu1 }
 0x69e   :  { %v1563_v56 = vld [vmem:[#allocation11] sm:$0xff] }
 0x69f   :  { %3062 = vtanh.f32 %v765_v55 }
 0x6a9   :  { %v3063_v57 = vpop.eup %3062 }
 0x6aa   :  { %767 = vst.msk [vmem:[#allocation2 + $0xc] sm:$0x3] %vm304_vm2, %v3063_v57  ;;  %2652 = vmatmul.mubr.msk.f32.vlgmr.msra.gmra.mrb[8].mxu0 %vm143_vm1, %v3063_v57  ;;  %v1564_v57 = vld [vmem:[#allocation11 + $0x8] sm:$0xff] }
 0x6ab   :  { %2673 = vmatprep.mubr.msk.f32.mxu0 %vm3249_vm0, %v3250_v1  ;;  %2929 = vmatpush3.bf16.msra.mxu0 %v3508_v5  ;;  %v2975_v58 = vpack.c.bf16 %v1564_v57, %v1563_v56  ;;  %v2286_v57 = vld [vmem:[%s3682_s2 + $0x18] sm:$0xff] }
 0x6ac   :  { %2930 = vmatprep.subr.bf16.mxu0 %v3248_v0 }
 0x6af   :  { %2932 = vmatpush3.bf16.msra.mxu0 %v3514_v7 }
 0x6b0   :  { %2939 = vmatprep.subr.bf16.mxu0 %v3248_v0 }
 0x6b2   :  { %2674 = vmatmul.mubr.msk.f32.vlgmr.msra.gmra.mrb[10].mxu0 %vm143_vm1, %v946_v8 }
 0x6b3   :  { %2941 = vmatpush3.bf16.msra.mxu0 %v3508_v5  ;;  %2695 = vmatprep.mubr.msk.f32.mxu0 %vm3249_vm0, %v3250_v1 }
 0x6b4   :  { %2942 = vmatprep.subr.bf16.mxu0 %v3248_v0 }
 0x6b7   :  { %2944 = vmatpush3.bf16.msra.mxu0 %v3514_v7 }
 0x6b8   :  { %2951 = vmatprep.subr.bf16.mxu0 %v3248_v0 }
 0x77d   :  { %v838_v10 = vpop.f32.mrb[8].mxu0 }
 0x77e   :  { %v842_v11 = vadd.f32 %v838_v10, %v768_v9  ;;  %v2653_v12 = vpop.f32.mrb[9].mxu0 }
 0x780   :  { %3064 = vtanh.f32 %v842_v11 }
 0x785   :  { %v1017_v15 = vpop.f32.mrb[10].mxu0 }
 0x786   :  { %v2675_v16 = vpop.f32.mrb[11].mxu0 }
 0x787   :  { %v2399_v16 = vld [vmem:[%s3692_s12] ss:$0 sm:$0xff] }
 0x78a   :  { %v3526_v13 = vpop.eup %3064 }
 0x78b   :  { %844 = vst.msk [vmem:[#allocation2 + $0xe] sm:$0x3] %vm304_vm2, %v3526_v13 }
 0x792   :  { %v855_v14 = vld [vmem:[#allocation2 + $0x8] sm:$0xff] }
 0x793   :  { %2663 = vmatmul.mubr.msk.f32.vlgmr.msra.gmra.mrb[8].mxu1 %vm143_vm1, %v855_v14 }
 0x794   :  { %2935 = vmatpush3.bf16.msra.mxu1 %v3508_v5  ;;  %2684 = vmatprep.mubr.msk.f32.mxu1 %vm3249_vm0, %v3250_v1 }
 0x795   :  { %2936 = vmatprep.subr.bf16.mxu1 %v3248_v0 }
 0x798   :  { %2938 = vmatpush3.bf16.msra.mxu1 %v3514_v7 }
 0x799   :  { %2945 = vmatprep.subr.bf16.mxu1 %v3248_v0 }
 0x866   :  { %v2664_v18 = vpop.f32.mrb[8].mxu1 }
 0x867   :  { %v940_v19 = vadd.f32 %v2664_v18, %v2388_v17  ;;  %v934_v20 = vpop.f32.mrb[9].mxu1 }
 0x868   :  { %v935_v21 = vadd.f32 %v2388_v17, %v934_v20 }
 0x869   :  { %944 = vst.msk [vmem:[#allocation3 + $0x8] sm:$0xff] %vm143_vm1, %v940_v19 }
 0x86a   :  { %943 = vst.msk [vmem:[#allocation3] sm:$0xff] %vm143_vm1, %v935_v21 }
 0x870   :  { %v1255_v40 = vld [vmem:[#allocation3 + $0x8] sm:$0x3]  ;;  %v1332_v45 = vld [vmem:[#allocation3 + $0xa] sm:$0x3]  ;;  %v1409_v51 = vld [vmem:[#allocation3 + $0xc] sm:$0x3] }
 0x871   :  { %v947_v22 = vld [vmem:[#allocation3] sm:$0x3]  ;;  %v1024_v25 = vld [vmem:[#allocation3 + $0x2] sm:$0x3]  ;;  %v1101_v30 = vld [vmem:[#allocation3 + $0x4] sm:$0x3] }
 0x872   :  { %v1021_v23 = vadd.f32 %v1017_v15, %v947_v22  ;;  %v1178_v35 = vld [vmem:[#allocation3 + $0x6] sm:$0x3] }
 0x874   :  { %3066 = vtanh.f32 %v1021_v23 }
 0x87e   :  { %v3067_v24 = vpop.eup %3066 }
 0x87f   :  { %1023 = vst.msk [vmem:[#allocation2] sm:$0x3] %vm304_vm2, %v3067_v24  ;;  %2685 = vmatmul.mubr.msk.f32.vlgmr.msra.gmra.mrb[10].mxu1 %vm143_vm1, %v3067_v24 }
 0x880   :  { %2947 = vmatpush3.bf16.msra.mxu1 %v3508_v5  ;;  %2706 = vmatprep.mubr.msk.f32.mxu1 %vm3249_vm0, %v3250_v1 }
 0x881   :  { %2948 = vmatprep.subr.bf16.mxu1 %v3248_v0 }
 0x884   :  { %2950 = vmatpush3.bf16.msra.mxu1 %v3514_v7 }
 0x885   :  { %2957 = vmatprep.subr.bf16.mxu1 %v3248_v0 }
 0x952   :  { %v1094_v26 = vpop.f32.mrb[10].mxu1 }
 0x953   :  { %v1098_v27 = vadd.f32 %v1094_v26, %v1024_v25  ;;  %v2686_v28 = vpop.f32.mrb[11].mxu1 }
 0x955   :  { %3068 = vtanh.f32 %v1098_v27 }
 0x95f   :  { %v3069_v29 = vpop.eup %3068 }
 0x960   :  { %1100 = vst.msk [vmem:[#allocation2 + $0x2] sm:$0x3] %vm304_vm2, %v3069_v29  ;;  %2696 = vmatmul.mubr.msk.f32.vlgmr.msra.gmra.mrb[12].mxu0 %vm143_vm1, %v3069_v29 }
 0x961   :  { %2953 = vmatpush3.bf16.msra.mxu0 %v3508_v5  ;;  %2717 = vmatprep.mubr.msk.f32.mxu0 %vm3249_vm0, %v3250_v1 }
 0x962   :  { %2954 = vmatprep.subr.bf16.mxu0 %v3248_v0 }
 0x965   :  { %2956 = vmatpush3.bf16.msra.mxu0 %v3514_v7 }
 0x966   :  { %2963 = vmatprep.subr.bf16.mxu0 %v3248_v0 }
 0xa33   :  { %v1171_v31 = vpop.f32.mrb[12].mxu0 }
 0xa34   :  { %v1175_v32 = vadd.f32 %v1171_v31, %v1101_v30  ;;  %v2697_v33 = vpop.f32.mrb[13].mxu0 }
 0xa36   :  { %3070 = vtanh.f32 %v1175_v32 }
 0xa40   :  { %v3071_v34 = vpop.eup %3070 }
 0xa41   :  { %1177 = vst.msk [vmem:[#allocation2 + $0x4] sm:$0x3] %vm304_vm2, %v3071_v34  ;;  %2707 = vmatmul.mubr.msk.f32.vlgmr.msra.gmra.mrb[12].mxu1 %vm143_vm1, %v3071_v34 }
 0xa42   :  { %2959 = vmatpush3.bf16.msra.mxu1 %v3508_v5  ;;  %2728 = vmatprep.mubr.msk.f32.mxu1 %vm3249_vm0, %v3250_v1 }
 0xa43   :  { %2960 = vmatprep.subr.bf16.mxu1 %v3248_v0 }
 0xa46   :  { %2962 = vmatpush3.bf16.msra.mxu1 %v3514_v7 }
 0xa47   :  { %2969 = vmatprep.subr.bf16.mxu1 %v3248_v0 }
 0xb14   :  { %v1248_v36 = vpop.f32.mrb[12].mxu1 }
 0xb15   :  { %v1252_v37 = vadd.f32 %v1248_v36, %v1178_v35  ;;  %v2708_v38 = vpop.f32.mrb[13].mxu1 }
 0xb17   :  { %3072 = vtanh.f32 %v1252_v37 }
 0xb21   :  { %v3073_v39 = vpop.eup %3072 }
 0xb22   :  { %1254 = vst.msk [vmem:[#allocation2 + $0x6] sm:$0x3] %vm304_vm2, %v3073_v39  ;;  %2718 = vmatmul.mubr.msk.f32.vlgmr.msra.gmra.mrb[14].mxu0 %vm143_vm1, %v3073_v39 }
 0xb23   :  { %2965 = vmatpush3.bf16.msra.mxu0 %v3508_v5  ;;  %2739 = vmatprep.mubr.msk.f32.mxu0 %vm3249_vm0, %v3250_v1 }
 0xb24   :  { %2966 = vmatprep.subr.bf16.mxu0 %v3248_v0 }
 0xb27   :  { %2968 = vmatpush3.bf16.msra.mxu0 %v3514_v7 }
 0xb28   :  { %2976 = vmatprep.subr.bf16.mxu0 %v2975_v58 }
 0xb29   :  { %v1572_v50 = vld [vmem:[#allocation2] sm:$0xff] }
 0xbf5   :  { %v1325_v41 = vpop.f32.mrb[14].mxu0 }
 0xbf6   :  { %v1329_v42 = vadd.f32 %v1325_v41, %v1255_v40  ;;  %v2719_v43 = vpop.f32.mrb[15].mxu0 }
 0xbf8   :  { %3074 = vtanh.f32 %v1329_v42 }
 0xc02   :  { %v3075_v44 = vpop.eup %3074 }
 0xc03   :  { %1331 = vst.msk [vmem:[#allocation2 + $0x8] sm:$0x3] %vm304_vm2, %v3075_v44  ;;  %2729 = vmatmul.mubr.msk.f32.vlgmr.msra.gmra.mrb[14].mxu1 %vm143_vm1, %v3075_v44 }
 0xc04   :  { %2971 = vmatpush3.bf16.msra.mxu1 %v3508_v5  ;;  %2750 = vmatprep.mubr.msk.f32.mxu1 %vm3249_vm0, %v3250_v1  ;;  %v3592_v5 = vpack.c.bf16 %v1570_v4, %v1569_v2 }
 0xc05   :  { %2972 = vmatprep.subr.bf16.mxu1 %v3248_v0 }
 0xc08   :  { %2974 = vmatpush3.bf16.msra.mxu1 %v3514_v7  ;;  %v1486_v7 = vld [vmem:[#allocation3 + $0xe] sm:$0x3] }
 0xc09   :  { %2983 = vmatprep.subr.bf16.mxu1 %v3248_v0 }
 0xcd6   :  { %v1402_v46 = vpop.f32.mrb[14].mxu1 }
 0xcd7   :  { %v1406_v47 = vadd.f32 %v1402_v46, %v1332_v45  ;;  %v2730_v48 = vpop.f32.mrb[15].mxu1 }
 0xcd9   :  { %3076 = vtanh.f32 %v1406_v47 }
 0xce3   :  { %v3077_v49 = vpop.eup %3076 }
 0xce4   :  { %1408 = vst.msk [vmem:[#allocation2 + $0xa] sm:$0x3] %vm304_vm2, %v3077_v49  ;;  %2740 = vmatmul.mubr.msk.f32.vlgmr.msra.gmra.mrb[16].mxu0 %vm143_vm1, %v3077_v49 }
 0xce5   :  { %2761 = vmatprep.mubr.msk.f32.mxu0 %vm143_vm1, %v1572_v50  ;;  %2978 = vmatpush3.bf16.msra.mxu0 %v2975_v58 }
 0xce6   :  { %2980 = vmatprep.subr.bf16.mxu0 %v2979_v61 }
 0xce9   :  { %2982 = vmatpush3.bf16.msra.mxu0 %v2979_v61 }
 0xcea   :  { %2989 = vmatprep.subr.bf16.mxu0 %v3248_v0 }
 0xdb7   :  { %v1479_v52 = vpop.f32.mrb[16].mxu0 }
 0xdb8   :  { %v1483_v53 = vadd.f32 %v1479_v52, %v1409_v51  ;;  %v2741_v54 = vpop.f32.mrb[17].mxu0 }
 0xdb9   :  { %v2283_v54 = vld [vmem:[%s3682_s2] sm:$0xff] }
 0xdba   :  { %3078 = vtanh.f32 %v1483_v53 }
 0xdc4   :  { %v3079_v55 = vpop.eup %3078 }
 0xdc5   :  { %1485 = vst.msk [vmem:[#allocation2 + $0xc] sm:$0x3] %vm304_vm2, %v3079_v55  ;;  %2751 = vmatmul.mubr.msk.f32.vlgmr.msra.gmra.mrb[16].mxu1 %vm143_vm1, %v3079_v55  ;;  %v2284_v55 = vld [vmem:[%s3682_s2 + $0x8] sm:$0xff] }
 0xdc6   :  { %2772 = vmatprep.mubr.msk.f32.mxu1 %vm3249_vm0, %v3250_v1  ;;  %2985 = vmatpush3.bf16.msra.mxu1 %v3589_v3  ;;  %v3032_v56 = vpack.c.bf16 %v2284_v55, %v2283_v54 }
 0xdc7   :  { %2986 = vmatprep.subr.bf16.mxu1 %v3248_v0 }
 0xdca   :  { %2988 = vmatpush3.bf16.msra.mxu1 %v3592_v5 }
 0xdcb   :  { %2995 = vmatprep.subr.bf16.mxu1 %v3248_v0 }
 0xdcd   :  { %2773 = vmatmul.mubr.msk.f32.vlgmr.msra.gmra.mrb[18].mxu1 %vm143_vm1, %v1664_v6 }
 0xdce   :  { %2997 = vmatpush3.bf16.msra.mxu1 %v3589_v3  ;;  %2794 = vmatprep.mubr.msk.f32.mxu1 %vm3249_vm0, %v3250_v1 }
 0xdcf   :  { %2998 = vmatprep.subr.bf16.mxu1 %v3248_v0 }
 0xdd2   :  { %3000 = vmatpush3.bf16.msra.mxu1 %v3592_v5 }
 0xdd3   :  { %3007 = vmatprep.subr.bf16.mxu1 %v3248_v0 }
 0xe98   :  { %v1556_v8 = vpop.f32.mrb[16].mxu1 }
 0xe99   :  { %v1560_v9 = vadd.f32 %v1556_v8, %v1486_v7  ;;  %v2752_v10 = vpop.f32.mrb[17].mxu1 }
 0xe9b   :  { %3080 = vtanh.f32 %v1560_v9 }
 0xea0   :  { %v1735_v14 = vpop.f32.mrb[18].mxu1 }
 0xea1   :  { %v2774_v15 = vpop.f32.mrb[19].mxu1 }
 0xea5   :  { %v3604_v11 = vpop.eup %3080 }
 0xea6   :  { %1562 = vst.msk [vmem:[#allocation2 + $0xe] sm:$0x3] %vm304_vm2, %v3604_v11  ;;  %v2274_v63 = vrot.slane %v3604_v11, 6 }
 0xead   :  { %v1573_v12 = vld [vmem:[#allocation2 + $0x8] sm:$0xff] }
 0xeae   :  { %2762 = vmatmul.mubr.msk.f32.vlgmr.msra.gmra.mrb[18].mxu0 %vm143_vm1, %v1573_v12 }
 0xeaf   :  { %2991 = vmatpush3.bf16.msra.mxu0 %v3589_v3  ;;  %2783 = vmatprep.mubr.msk.f32.mxu0 %vm3249_vm0, %v3250_v1 }
 0xeb0   :  { %2992 = vmatprep.subr.bf16.mxu0 %v3248_v0 }
 0xeb3   :  { %2994 = vmatpush3.bf16.msra.mxu0 %v3592_v5 }
 0xeb4   :  { %3001 = vmatprep.subr.bf16.mxu0 %v3248_v0 }
 0xf81   :  { %v2763_v17 = vpop.f32.mrb[18].mxu0 }
 0xf82   :  { %v1658_v18 = vadd.f32 %v2763_v17, %v2399_v16  ;;  %v1652_v19 = vpop.f32.mrb[19].mxu0 }
 0xf83   :  { %v1653_v20 = vadd.f32 %v2399_v16, %v1652_v19 }
 0xf84   :  { %1662 = vst.msk [vmem:[#allocation3 + $0x8] sm:$0xff] %vm143_vm1, %v1658_v18 }
 0xf85   :  { %1661 = vst.msk [vmem:[#allocation3] sm:$0xff] %vm143_vm1, %v1653_v20 }
 0xf8b   :  { %v1969_v39 = vld [vmem:[#allocation3 + $0x8] sm:$0x3]  ;;  %v2045_v44 = vld [vmem:[#allocation3 + $0xa] sm:$0x3]  ;;  %v2121_v49 = vld [vmem:[#allocation3 + $0xc] sm:$0x3] }
 0xf8c   :  { %v1665_v21 = vld [vmem:[#allocation3] sm:$0x3]  ;;  %v1741_v24 = vld [vmem:[#allocation3 + $0x2] sm:$0x3]  ;;  %v1817_v29 = vld [vmem:[#allocation3 + $0x4] sm:$0x3] }
 0xf8d   :  { %v1739_v22 = vadd.f32 %v1735_v14, %v1665_v21  ;;  %v1893_v34 = vld [vmem:[#allocation3 + $0x6] sm:$0x3]  ;;  %v2197_v59 = vld [vmem:[#allocation3 + $0xe] sm:$0x3] }
 0xf8f   :  { %3082 = vtanh.f32 %v1739_v22 }
 0xf99   :  { %v3083_v23 = vpop.eup %3082 }
 0xf9a   :  { %2784 = vmatmul.mubr.msk.f32.vlgmr.msra.gmra.mrb[20].mxu0 %vm143_vm1, %v3083_v23 }
 0xf9b   :  { %3003 = vmatpush3.bf16.msra.mxu0 %v3589_v3  ;;  %2805 = vmatprep.mubr.msk.f32.mxu0 %vm3249_vm0, %v3250_v1 }
 0xf9c   :  { %3004 = vmatprep.subr.bf16.mxu0 %v3248_v0 }
 0xf9f   :  { %3006 = vmatpush3.bf16.msra.mxu0 %v3592_v5 }
 0xfa0   :  { %3013 = vmatprep.subr.bf16.mxu0 %v3248_v0 }
0x106d   :  { %v1811_v25 = vpop.f32.mrb[20].mxu0 }
0x106e   :  { %v1815_v26 = vadd.f32 %v1811_v25, %v1741_v24  ;;  %v2785_v27 = vpop.f32.mrb[21].mxu0 }
0x1070   :  { %3084 = vtanh.f32 %v1815_v26 }
0x107a   :  { %v3085_v28 = vpop.eup %3084 }
0x107b   :  { %2795 = vmatmul.mubr.msk.f32.vlgmr.msra.gmra.mrb[20].mxu1 %vm143_vm1, %v3085_v28 }
0x107c   :  { %3009 = vmatpush3.bf16.msra.mxu1 %v3589_v3  ;;  %2816 = vmatprep.mubr.msk.f32.mxu1 %vm3249_vm0, %v3250_v1 }
0x107d   :  { %3010 = vmatprep.subr.bf16.mxu1 %v3248_v0 }
0x1080   :  { %3012 = vmatpush3.bf16.msra.mxu1 %v3592_v5 }
0x1081   :  { %3019 = vmatprep.subr.bf16.mxu1 %v3248_v0 }
0x114e   :  { %v1887_v30 = vpop.f32.mrb[20].mxu1 }
0x114f   :  { %v1891_v31 = vadd.f32 %v1887_v30, %v1817_v29  ;;  %v2796_v32 = vpop.f32.mrb[21].mxu1 }
0x1151   :  { %3086 = vtanh.f32 %v1891_v31 }
0x115b   :  { %v3087_v33 = vpop.eup %3086 }
0x115c   :  { %2806 = vmatmul.mubr.msk.f32.vlgmr.msra.gmra.mrb[22].mxu0 %vm143_vm1, %v3087_v33 }
0x115d   :  { %3015 = vmatpush3.bf16.msra.mxu0 %v3589_v3  ;;  %2827 = vmatprep.mubr.msk.f32.mxu0 %vm3249_vm0, %v3250_v1 }
0x115e   :  { %3016 = vmatprep.subr.bf16.mxu0 %v3248_v0 }
0x1161   :  { %3018 = vmatpush3.bf16.msra.mxu0 %v3592_v5 }
0x1162   :  { %3025 = vmatprep.subr.bf16.mxu0 %v3248_v0 }
0x122f   :  { %v1963_v35 = vpop.f32.mrb[22].mxu0 }
0x1230   :  { %v1967_v36 = vadd.f32 %v1963_v35, %v1893_v34  ;;  %v2807_v37 = vpop.f32.mrb[23].mxu0 }
0x1232   :  { %3088 = vtanh.f32 %v1967_v36 }
0x123c   :  { %v3089_v38 = vpop.eup %3088 }
0x123d   :  { %2817 = vmatmul.mubr.msk.f32.vlgmr.msra.gmra.mrb[22].mxu1 %vm143_vm1, %v3089_v38 }
0x123e   :  { %3021 = vmatpush3.bf16.msra.mxu1 %v3589_v3  ;;  %2838 = vmatprep.mubr.msk.f32.mxu1 %vm3249_vm0, %v3250_v1 }
0x123f   :  { %3022 = vmatprep.subr.bf16.mxu1 %v3248_v0 }
0x1242   :  { %3024 = vmatpush3.bf16.msra.mxu1 %v3592_v5 }
0x1243   :  { %3031 = vmatprep.subr.bf16.mxu1 %v3248_v0 }
0x1310   :  { %v2039_v40 = vpop.f32.mrb[22].mxu1 }
0x1311   :  { %v2043_v41 = vadd.f32 %v2039_v40, %v1969_v39  ;;  %v2818_v42 = vpop.f32.mrb[23].mxu1 }
0x1313   :  { %3090 = vtanh.f32 %v2043_v41 }
0x131d   :  { %v3091_v43 = vpop.eup %3090 }
0x131e   :  { %2828 = vmatmul.mubr.msk.f32.vlgmr.msra.gmra.mrb[24].mxu0 %vm143_vm1, %v3091_v43 }
0x131f   :  { %3027 = vmatpush3.bf16.msra.mxu0 %v3589_v3  ;;  %2849 = vmatprep.mubr.msk.f32.mxu0 %vm3249_vm0, %v3250_v1  ;;  %v2280_v3 = vsel %vm2279_vm3, %v3526_v13, %v2274_v63 }
0x1320   :  { %3028 = vmatprep.subr.bf16.mxu0 %v3248_v0 }
0x1323   :  { %3030 = vmatpush3.bf16.msra.mxu0 %v3592_v5  ;;  %v2410_v5 = vld [vmem:[%s3683_s3] ss:$0 sm:$0xff] }
0x13f1   :  { %v2115_v45 = vpop.f32.mrb[24].mxu0 }
0x13f2   :  { %v2119_v46 = vadd.f32 %v2115_v45, %v2045_v44  ;;  %v2829_v47 = vpop.f32.mrb[25].mxu0 }
0x13f4   :  { %3092 = vtanh.f32 %v2119_v46 }
0x13fe   :  { %v3093_v48 = vpop.eup %3092 }
0x13ff   :  { %2839 = vmatmul.mubr.msk.f32.vlgmr.msra.gmra.mrb[24].mxu1 %vm143_vm1, %v3093_v48 }
0x1400   :  { %2860 = vmatprep.mubr.msk.f32.mxu1 %vm3249_vm0, %v3250_v1  ;;  %3033 = vmatpush3.bf16.msra.mxu1 %v3032_v56  ;;  %v2285_v1 = vld [vmem:[%s3682_s2 + $0x10] sm:$0xff] }
0x1401   :  { %3034 = vmatprep.subr.bf16.mxu1 %v3248_v0  ;;  %v3035_v58 = vpack.c.bf16 %v2286_v57, %v2285_v1 }
0x1404   :  { %3036 = vmatpush3.bf16.msra.mxu1 %v3035_v58 }
0x14d2   :  { %v2191_v50 = vpop.f32.mrb[24].mxu1 }
0x14d3   :  { %v2195_v51 = vadd.f32 %v2191_v50, %v2121_v49  ;;  %v2840_v52 = vpop.f32.mrb[25].mxu1 }
0x14d5   :  { %3094 = vtanh.f32 %v2195_v51 }
0x14df   :  { %v3095_v53 = vpop.eup %3094 }
0x14e0   :  { %2850 = vmatmul.mubr.msk.f32.vlgmr.msra.gmra.mrb[26].mxu0 %vm143_vm1, %v3095_v53 }
0x15b3   :  { %v2267_v60 = vpop.f32.mrb[26].mxu0 }
0x15b4   :  { %v2271_v61 = vadd.f32 %v2267_v60, %v2197_v59  ;;  %v2851_v62 = vpop.f32.mrb[27].mxu0 }
0x15b6   :  { %3096 = vtanh.f32 %v2271_v61 }
0x15c0   :  { %v3097_v2 = vpop.eup %3096 }
0x15c1   :  { %v2277_v0 = vrot.slane %v3097_v2, 4 }
0x15c3   :  { %v2282_v4 = vsel %vm2281_vm4, %v2280_v3, %v2277_v0 }
0x15c4   :  { %2861 = vmatmul.mubr.msk.f32.vlgmr.msra.gmra.mrb[26].mxu1 %vm143_vm1, %v2282_v4 }
0x1697   :  { %v2363_v6 = vpop.f32.mrb[26].mxu1 }
0x1698   :  { %v2364_v7 = vadd.f32 %v2410_v5, %v2363_v6  ;;  %v2862_v8 = vpop.f32.mrb[27].mxu1 }
0x169a   :  { %2368 = vst.msk [vmem:[%s3693_s13] sm:$0x3f] %vm2367_vm5, %v2364_v7 }
0x169b   :  { %2373 = vsyncpa [#allocation5], 1 }
0x169c   :  { %2374 = vsyncpa [#allocation7], 1 }
0x169d   :  { %2375 = vsyncpa [#allocation10], 1 }
0x169e   :  { %2376 = vsyncpa [#allocation13], 1 }

</bundles_post_ra>
